<compile_context>
chip_gen: v5e
topology: v5e:2x2
jax: 0.10.0
libtpu: 0.0.40
codegen_flags: <defaults>
</compile_context>

<pallas_src>
import functools

import jax
import jax.numpy as jnp
from jax.experimental import pallas as pl
from jax.experimental.pallas import tpu as pltpu

TAU = 2.0
INV_TAU = 1.0 / TAU
V_THRESHOLD = 1.0
V_RESET = 0.0  # hard-reset value (the simplified update below assumes 0)

MAX_UNROLL_T = 64            # bound on fully-unrolled LIF steps per grid step
VMEM_ROW_BUDGET = 24 * 1024 * 1024  # conservative working-set budget (v7x ok)


def _round_up(x, m):
    return (x + m - 1) // m * m


def _spike_ffn_kernel(x_ref, w1_ref, w2_ref, o_ref, v_ref, s_ref, *, t_blk, b_tile):
    # x_ref : (R, in_p)   bf16, R = t_blk * b_tile, rows are time-major
    # w1_ref: (in_p, out_p)  bf16  (constant block index -> fetched once)
    # w2_ref: (out_p, out_p) bf16  (constant block index -> fetched once)
    # o_ref : (R, out_p)  f32
    # v_ref : (b_tile, out_p) f32  membrane potential carried across the
    #                              sequential time-block grid axis
    # s_ref : (R, out_p)  bf16     spike buffer feeding the second matmul
    t_idx = pl.program_id(1)

    @pl.when(t_idx == 0)
    def _init():
        v_ref[...] = jnp.zeros_like(v_ref)

    # Linear 1 over the whole time block: one big MXU matmul (bf16 -> f32 acc).
    h = jnp.dot(x_ref[...], w1_ref[...], preferred_element_type=jnp.float32)

    # LIF recurrence: the only truly sequential part.  t_blk is a static
    # Python int (<= MAX_UNROLL_T) -> full unroll; all slices are static and
    # sublane (8) aligned since b_tile % 8 == 0.
    v = v_ref[...]
    for t in range(t_blk):
        h_t = h[t * b_tile:(t + 1) * b_tile, :]
        v = v + (h_t - v) * INV_TAU          # tau=2, v_reset=0 (no divide)
        mask = v >= V_THRESHOLD
        s_ref[t * b_tile:(t + 1) * b_tile, :] = mask.astype(jnp.bfloat16)
        v = jnp.where(mask, V_RESET, v)      # hard reset
    v_ref[...] = v

    # Linear 2 over the whole time block (spikes are exact 0/1 in bf16).
    o_ref[...] = jnp.dot(s_ref[...], w2_ref[...],
                         preferred_element_type=jnp.float32)


@jax.jit
def spike_ffn(x, w1, w2):
    """x: [T, B, in_ch] f32; w1: [out_ch, in_ch]; w2: [out_ch, out_ch].

    Returns [T, B, out_ch] f32 (matches the PyTorch module's .float())."""
    T, B, in_ch = x.shape
    out_ch = w1.shape[0]

    # ---- TPU-friendly padded dims -----------------------------------------
    in_p = _round_up(in_ch, 128)    # lane-dense contraction dim
    out_p = _round_up(out_ch, 128)  # lane-dense output dim
    b_p = _round_up(B, 8)           # sublane-dense rows per time step

    # Batch tiling: 'parallel' grid axis so a second TensorCore (v7x) gets work.
    num_bt = 2 if (b_p % 16 == 0) else 1
    b_tile = b_p // num_bt

    # Time blocking: amortize per-grid-step overhead and feed the MXU a large
    # LHS.  Rows sized from a VMEM budget; unroll length capped.
    weight_bytes = (in_p * out_p + out_p * out_p) * 2 * 2       # bf16, 2 bufs
    bytes_per_row = 4 * in_p + 14 * out_p   # x(2B x2) + out(4B x2) + s(2B) + h(4B)
    rows_cap = max(b_tile, (VMEM_ROW_BUDGET - weight_bytes) // bytes_per_row)
    t_blk = max(1, min(T, rows_cap // b_tile, MAX_UNROLL_T))
    t_pad = _round_up(T, t_blk)
    rows = t_blk * b_tile

    # ---- shape the operands (glue; fused by XLA under jit) -----------------
    xp = jnp.zeros((t_pad, b_p, in_p), jnp.float32)
    xp = xp.at[:T, :B, :in_ch].set(x.astype(jnp.float32))
    xp = xp.astype(jnp.bfloat16)
    # (t_pad, b_p, in_p) -> (num_bt, t_pad * b_tile, in_p), time-major rows.
    xp = xp.reshape(t_pad, num_bt, b_tile, in_p).transpose(1, 0, 2, 3)
    xp = xp.reshape(num_bt, t_pad * b_tile, in_p)

    w1t = (jnp.zeros((in_p, out_p), jnp.float32)
           .at[:in_ch, :out_ch].set(jnp.asarray(w1, jnp.float32).T)
           .astype(jnp.bfloat16))
    w2t = (jnp.zeros((out_p, out_p), jnp.float32)
           .at[:out_ch, :out_ch].set(jnp.asarray(w2, jnp.float32).T)
           .astype(jnp.bfloat16))

    kernel = functools.partial(_spike_ffn_kernel, t_blk=t_blk, b_tile=b_tile)

    total_rows = num_bt * t_pad * b_tile
    cost = pl.CostEstimate(
        flops=2 * total_rows * out_p * (in_p + out_p),
        transcendentals=0,
        bytes_accessed=(total_rows * in_p * 2          # x (bf16)
                        + in_p * out_p * 2             # w1 (bf16)
                        + out_p * out_p * 2            # w2 (bf16)
                        + total_rows * out_p * 4),     # output (f32)
    )

    out = pl.pallas_call(
        kernel,
        out_shape=jax.ShapeDtypeStruct((num_bt, t_pad * b_tile, out_p),
                                       jnp.float32),
        grid_spec=pltpu.PrefetchScalarGridSpec(
            num_scalar_prefetch=0,
            grid=(num_bt, t_pad // t_blk),
            in_specs=[
                # Leading batch-tile dim squeezed (None) -> kernel sees 2-D tiles.
                pl.BlockSpec((None, rows, in_p), lambda b, t: (b, t, 0)),
                pl.BlockSpec((in_p, out_p), lambda b, t: (0, 0)),
                pl.BlockSpec((out_p, out_p), lambda b, t: (0, 0)),
            ],
            out_specs=pl.BlockSpec((None, rows, out_p), lambda b, t: (b, t, 0)),
            scratch_shapes=[
                pltpu.VMEM((b_tile, out_p), jnp.float32),   # membrane v
                pltpu.VMEM((rows, out_p), jnp.bfloat16),    # spike block (0/1)
            ],
        ),
        compiler_params=pltpu.CompilerParams(
            # batch tiles are independent (megacore split);
            # the time-block axis carries LIF state -> must stay sequential.
            dimension_semantics=("parallel", "arbitrary"),
            vmem_limit_bytes=64 * 1024 * 1024,
        ),
        cost_estimate=cost,
    )(xp, w1t, w2t)

    out = out.reshape(num_bt, t_pad, b_tile, out_p).transpose(1, 0, 2, 3)
    out = out.reshape(t_pad, b_p, out_p)
    return out[:T, :B, :out_ch]


def spike_ffn_reference(x, w1, w2):
    """Pure-JAX reference mirroring the PyTorch module; uses the same bf16
    matmul precision (f32 accumulation) as the kernel, f32 LIF recurrence."""
    xb = x.astype(jnp.bfloat16)
    w1b = jnp.asarray(w1, jnp.float32).astype(jnp.bfloat16)
    w2b = jnp.asarray(w2, jnp.float32).astype(jnp.bfloat16)
    h = jnp.einsum("tbi,oi->tbo", xb, w1b, preferred_element_type=jnp.float32)

    def step(v, h_t):
        v = v + (h_t - v) * INV_TAU
        s = (v >= V_THRESHOLD).astype(jnp.float32)
        v = jnp.where(s > 0.0, V_RESET, v)
        return v, s

    v0 = jnp.zeros(h.shape[1:], jnp.float32)
    _, spikes = jax.lax.scan(step, v0, h)
    return jnp.einsum("tbo,po->tbp", spikes.astype(jnp.bfloat16), w2b,
                      preferred_element_type=jnp.float32)


if __name__ == "__main__":
    T, B, in_ch, out_ch = 8, 2, 16, 32

    key = jax.random.PRNGKey(0)
    kx, kw1, kw2 = jax.random.split(key, 3)

    x = jax.random.normal(kx, (T, B, in_ch), dtype=jnp.float32)
    bound1 = 1.0 / (in_ch ** 0.5)
    bound2 = 1.0 / (out_ch ** 0.5)
    w1 = jax.random.uniform(kw1, (out_ch, in_ch), jnp.float32, -bound1, bound1)
    w2 = jax.random.uniform(kw2, (out_ch, out_ch), jnp.float32, -bound2, bound2)

    out = jax.block_until_ready(spike_ffn(x, w1, w2))
    ref = jax.block_until_ready(spike_ffn_reference(x, w1, w2))

    assert out.shape == (T, B, out_ch)
    assert out.dtype == jnp.float32
    max_err = float(jnp.max(jnp.abs(out - ref)))
    assert jnp.allclose(out, ref, atol=1e-3, rtol=1e-3), max_err

    print("KERNEL_OK")
</pallas_src>

<mosaic_0001>
module attributes {stable_mosaic.version = 11 : i64} {
  func.func @_spike_ffn_kernel(%arg0: i32, %arg1: i32, %arg2: memref<1x64x128xbf16, #tpu.memory_space<vmem>>, %arg3: memref<128x128xbf16, #tpu.memory_space<vmem>>, %arg4: memref<128x128xbf16, #tpu.memory_space<vmem>>, %arg5: memref<1x64x128xf32, #tpu.memory_space<vmem>>, %arg6: memref<8x128xf32, #tpu.memory_space<vmem>>, %arg7: memref<64x128xbf16, #tpu.memory_space<vmem>>) attributes {dimension_semantics = [#tpu.dimension_semantics<parallel>, #tpu.dimension_semantics<arbitrary>], iteration_bounds = array<i64: 1, 1>, scalar_prefetch = 0 : i64, scratch_operands = 2 : i64, tpu.core_type = #tpu.core_type<tc>, window_params = [{transform_indices = @transform_0, window_bounds = array<i64: 1, 64, 128>}, {pipeline_mode = #tpu.pipeline_mode<synchronous>, transform_indices = @transform_1, window_bounds = array<i64: 128, 128>}, {pipeline_mode = #tpu.pipeline_mode<synchronous>, transform_indices = @transform_2, window_bounds = array<i64: 128, 128>}, {transform_indices = @transform_3, window_bounds = array<i64: 1, 64, 128>}]} {
    %c0_i32 = arith.constant 0 : i32
    %0 = arith.cmpi eq, %arg1, %c0_i32 : i32
    %1 = arith.extui %0 : i1 to i32
    %c0_i32_0 = arith.constant 0 : i32
    %2 = arith.cmpi ne, %1, %c0_i32_0 : i32
    scf.if %2 {
      %cst_50 = arith.constant 0.000000e+00 : f32
      %119 = vector.broadcast %cst_50 : f32 to vector<8x128xf32>
      %c0_51 = arith.constant 0 : index
      %c0_52 = arith.constant 0 : index
      %120 = vector.load %arg6[%c0_51, %c0_52] : memref<8x128xf32, #tpu.memory_space<vmem>>, vector<8x128xf32>
      tpu.vector_store %arg6[%c0_51, %c0_52], %119 {strides = array<i32>} : memref<8x128xf32, #tpu.memory_space<vmem>>, vector<8x128xf32>,
    } else {
    }
    %c0 = arith.constant 0 : index
    %c0_1 = arith.constant 0 : index
    %c0_2 = arith.constant 0 : index
    %3 = vector.load %arg2[%c0, %c0_1, %c0_2] : memref<1x64x128xbf16, #tpu.memory_space<vmem>>, vector<1x64x128xbf16>
    %4 = vector.shape_cast %3 : vector<1x64x128xbf16> to vector<64x128xbf16>
    %c0_3 = arith.constant 0 : index
    %c0_4 = arith.constant 0 : index
    %5 = vector.load %arg3[%c0_3, %c0_4] : memref<128x128xbf16, #tpu.memory_space<vmem>>, vector<128x128xbf16>
    %cst = arith.constant dense<0.000000e+00> : vector<64x128xf32>
    %6 = tpu.matmul %4, %5, %cst {dimension_numbers = #tpu.dot_dimension_numbers<[1], [0], [0], [1], [0, 0, 1, 1], [], []>} : vector<64x128xbf16>, vector<128x128xbf16>, vector<64x128xf32> -> vector<64x128xf32>
    %c0_5 = arith.constant 0 : index
    %c0_6 = arith.constant 0 : index
    %7 = vector.load %arg6[%c0_5, %c0_6] : memref<8x128xf32, #tpu.memory_space<vmem>>, vector<8x128xf32>
    %8 = vector.extract_strided_slice %6 {offsets = [0, 0], sizes = [8, 128], strides = [1, 1]} : vector<64x128xf32> to vector<8x128xf32>
    %9 = arith.subf %8, %7 : vector<8x128xf32>
    %cst_7 = arith.constant 5.000000e-01 : f32
    %10 = vector.broadcast %cst_7 : f32 to vector<8x128xf32>
    %11 = arith.mulf %9, %10 : vector<8x128xf32>
    %12 = arith.addf %7, %11 : vector<8x128xf32>
    %cst_8 = arith.constant 1.000000e+00 : f32
    %13 = vector.broadcast %cst_8 : f32 to vector<8x128xf32>
    %14 = arith.cmpf oge, %12, %13 : vector<8x128xf32>
    %15 = arith.extui %14 : vector<8x128xi1> to vector<8x128xi32>
    %16 = arith.sitofp %15 : vector<8x128xi32> to vector<8x128xf32>
    %17 = arith.truncf %16 : vector<8x128xf32> to vector<8x128xbf16>
    %c0_9 = arith.constant 0 : index
    %c0_10 = arith.constant 0 : index
    %18 = vector.load %arg7[%c0_9, %c0_10] : memref<64x128xbf16, #tpu.memory_space<vmem>>, vector<8x128xbf16>
    tpu.vector_store %arg7[%c0_9, %c0_10], %17 {strides = array<i32>} : memref<64x128xbf16, #tpu.memory_space<vmem>>, vector<8x128xbf16>,
    %cst_11 = arith.constant 0.000000e+00 : f32
    %19 = vector.broadcast %cst_11 : f32 to vector<8x128xf32>
    %20 = arith.select %14, %19, %12 : vector<8x128xi1>, vector<8x128xf32>
    %21 = vector.extract_strided_slice %6 {offsets = [8, 0], sizes = [8, 128], strides = [1, 1]} : vector<64x128xf32> to vector<8x128xf32>
    %22 = arith.subf %21, %20 : vector<8x128xf32>
    %cst_12 = arith.constant 5.000000e-01 : f32
    %23 = vector.broadcast %cst_12 : f32 to vector<8x128xf32>
    %24 = arith.mulf %22, %23 : vector<8x128xf32>
    %25 = arith.addf %20, %24 : vector<8x128xf32>
    %cst_13 = arith.constant 1.000000e+00 : f32
    %26 = vector.broadcast %cst_13 : f32 to vector<8x128xf32>
    %27 = arith.cmpf oge, %25, %26 : vector<8x128xf32>
    %28 = arith.extui %27 : vector<8x128xi1> to vector<8x128xi32>
    %29 = arith.sitofp %28 : vector<8x128xi32> to vector<8x128xf32>
    %30 = arith.truncf %29 : vector<8x128xf32> to vector<8x128xbf16>
    %c8 = arith.constant 8 : index
    %c0_14 = arith.constant 0 : index
    %31 = vector.load %arg7[%c8, %c0_14] : memref<64x128xbf16, #tpu.memory_space<vmem>>, vector<8x128xbf16>
    tpu.vector_store %arg7[%c8, %c0_14], %30 {strides = array<i32>} : memref<64x128xbf16, #tpu.memory_space<vmem>>, vector<8x128xbf16>,
    %cst_15 = arith.constant 0.000000e+00 : f32
    %32 = vector.broadcast %cst_15 : f32 to vector<8x128xf32>
    %33 = arith.select %27, %32, %25 : vector<8x128xi1>, vector<8x128xf32>
    %34 = vector.extract_strided_slice %6 {offsets = [16, 0], sizes = [8, 128], strides = [1, 1]} : vector<64x128xf32> to vector<8x128xf32>
    %35 = arith.subf %34, %33 : vector<8x128xf32>
    %cst_16 = arith.constant 5.000000e-01 : f32
    %36 = vector.broadcast %cst_16 : f32 to vector<8x128xf32>
    %37 = arith.mulf %35, %36 : vector<8x128xf32>
    %38 = arith.addf %33, %37 : vector<8x128xf32>
    %cst_17 = arith.constant 1.000000e+00 : f32
    %39 = vector.broadcast %cst_17 : f32 to vector<8x128xf32>
    %40 = arith.cmpf oge, %38, %39 : vector<8x128xf32>
    %41 = arith.extui %40 : vector<8x128xi1> to vector<8x128xi32>
    %42 = arith.sitofp %41 : vector<8x128xi32> to vector<8x128xf32>
    %43 = arith.truncf %42 : vector<8x128xf32> to vector<8x128xbf16>
    %c16 = arith.constant 16 : index
    %c0_18 = arith.constant 0 : index
    %44 = vector.load %arg7[%c16, %c0_18] : memref<64x128xbf16, #tpu.memory_space<vmem>>, vector<8x128xbf16>
    tpu.vector_store %arg7[%c16, %c0_18], %43 {strides = array<i32>} : memref<64x128xbf16, #tpu.memory_space<vmem>>, vector<8x128xbf16>,
    %cst_19 = arith.constant 0.000000e+00 : f32
    %45 = vector.broadcast %cst_19 : f32 to vector<8x128xf32>
    %46 = arith.select %40, %45, %38 : vector<8x128xi1>, vector<8x128xf32>
    %47 = vector.extract_strided_slice %6 {offsets = [24, 0], sizes = [8, 128], strides = [1, 1]} : vector<64x128xf32> to vector<8x128xf32>
    %48 = arith.subf %47, %46 : vector<8x128xf32>
    %cst_20 = arith.constant 5.000000e-01 : f32
    %49 = vector.broadcast %cst_20 : f32 to vector<8x128xf32>
    %50 = arith.mulf %48, %49 : vector<8x128xf32>
    %51 = arith.addf %46, %50 : vector<8x128xf32>
    %cst_21 = arith.constant 1.000000e+00 : f32
    %52 = vector.broadcast %cst_21 : f32 to vector<8x128xf32>
    %53 = arith.cmpf oge, %51, %52 : vector<8x128xf32>
    %54 = arith.extui %53 : vector<8x128xi1> to vector<8x128xi32>
    %55 = arith.sitofp %54 : vector<8x128xi32> to vector<8x128xf32>
    %56 = arith.truncf %55 : vector<8x128xf32> to vector<8x128xbf16>
    %c24 = arith.constant 24 : index
    %c0_22 = arith.constant 0 : index
    %57 = vector.load %arg7[%c24, %c0_22] : memref<64x128xbf16, #tpu.memory_space<vmem>>, vector<8x128xbf16>
    tpu.vector_store %arg7[%c24, %c0_22], %56 {strides = array<i32>} : memref<64x128xbf16, #tpu.memory_space<vmem>>, vector<8x128xbf16>,
    %cst_23 = arith.constant 0.000000e+00 : f32
    %58 = vector.broadcast %cst_23 : f32 to vector<8x128xf32>
    %59 = arith.select %53, %58, %51 : vector<8x128xi1>, vector<8x128xf32>
    %60 = vector.extract_strided_slice %6 {offsets = [32, 0], sizes = [8, 128], strides = [1, 1]} : vector<64x128xf32> to vector<8x128xf32>
    %61 = arith.subf %60, %59 : vector<8x128xf32>
    %cst_24 = arith.constant 5.000000e-01 : f32
    %62 = vector.broadcast %cst_24 : f32 to vector<8x128xf32>
    %63 = arith.mulf %61, %62 : vector<8x128xf32>
    %64 = arith.addf %59, %63 : vector<8x128xf32>
    %cst_25 = arith.constant 1.000000e+00 : f32
    %65 = vector.broadcast %cst_25 : f32 to vector<8x128xf32>
    %66 = arith.cmpf oge, %64, %65 : vector<8x128xf32>
    %67 = arith.extui %66 : vector<8x128xi1> to vector<8x128xi32>
    %68 = arith.sitofp %67 : vector<8x128xi32> to vector<8x128xf32>
    %69 = arith.truncf %68 : vector<8x128xf32> to vector<8x128xbf16>
    %c32 = arith.constant 32 : index
    %c0_26 = arith.constant 0 : index
    %70 = vector.load %arg7[%c32, %c0_26] : memref<64x128xbf16, #tpu.memory_space<vmem>>, vector<8x128xbf16>
    tpu.vector_store %arg7[%c32, %c0_26], %69 {strides = array<i32>} : memref<64x128xbf16, #tpu.memory_space<vmem>>, vector<8x128xbf16>,
    %cst_27 = arith.constant 0.000000e+00 : f32
    %71 = vector.broadcast %cst_27 : f32 to vector<8x128xf32>
    %72 = arith.select %66, %71, %64 : vector<8x128xi1>, vector<8x128xf32>
    %73 = vector.extract_strided_slice %6 {offsets = [40, 0], sizes = [8, 128], strides = [1, 1]} : vector<64x128xf32> to vector<8x128xf32>
    %74 = arith.subf %73, %72 : vector<8x128xf32>
    %cst_28 = arith.constant 5.000000e-01 : f32
    %75 = vector.broadcast %cst_28 : f32 to vector<8x128xf32>
    %76 = arith.mulf %74, %75 : vector<8x128xf32>
    %77 = arith.addf %72, %76 : vector<8x128xf32>
    %cst_29 = arith.constant 1.000000e+00 : f32
    %78 = vector.broadcast %cst_29 : f32 to vector<8x128xf32>
    %79 = arith.cmpf oge, %77, %78 : vector<8x128xf32>
    %80 = arith.extui %79 : vector<8x128xi1> to vector<8x128xi32>
    %81 = arith.sitofp %80 : vector<8x128xi32> to vector<8x128xf32>
    %82 = arith.truncf %81 : vector<8x128xf32> to vector<8x128xbf16>
    %c40 = arith.constant 40 : index
    %c0_30 = arith.constant 0 : index
    %83 = vector.load %arg7[%c40, %c0_30] : memref<64x128xbf16, #tpu.memory_space<vmem>>, vector<8x128xbf16>
    tpu.vector_store %arg7[%c40, %c0_30], %82 {strides = array<i32>} : memref<64x128xbf16, #tpu.memory_space<vmem>>, vector<8x128xbf16>,
    %cst_31 = arith.constant 0.000000e+00 : f32
    %84 = vector.broadcast %cst_31 : f32 to vector<8x128xf32>
    %85 = arith.select %79, %84, %77 : vector<8x128xi1>, vector<8x128xf32>
    %86 = vector.extract_strided_slice %6 {offsets = [48, 0], sizes = [8, 128], strides = [1, 1]} : vector<64x128xf32> to vector<8x128xf32>
    %87 = arith.subf %86, %85 : vector<8x128xf32>
    %cst_32 = arith.constant 5.000000e-01 : f32
    %88 = vector.broadcast %cst_32 : f32 to vector<8x128xf32>
    %89 = arith.mulf %87, %88 : vector<8x128xf32>
    %90 = arith.addf %85, %89 : vector<8x128xf32>
    %cst_33 = arith.constant 1.000000e+00 : f32
    %91 = vector.broadcast %cst_33 : f32 to vector<8x128xf32>
    %92 = arith.cmpf oge, %90, %91 : vector<8x128xf32>
    %93 = arith.extui %92 : vector<8x128xi1> to vector<8x128xi32>
    %94 = arith.sitofp %93 : vector<8x128xi32> to vector<8x128xf32>
    %95 = arith.truncf %94 : vector<8x128xf32> to vector<8x128xbf16>
    %c48 = arith.constant 48 : index
    %c0_34 = arith.constant 0 : index
    %96 = vector.load %arg7[%c48, %c0_34] : memref<64x128xbf16, #tpu.memory_space<vmem>>, vector<8x128xbf16>
    tpu.vector_store %arg7[%c48, %c0_34], %95 {strides = array<i32>} : memref<64x128xbf16, #tpu.memory_space<vmem>>, vector<8x128xbf16>,
    %cst_35 = arith.constant 0.000000e+00 : f32
    %97 = vector.broadcast %cst_35 : f32 to vector<8x128xf32>
    %98 = arith.select %92, %97, %90 : vector<8x128xi1>, vector<8x128xf32>
    %99 = vector.extract_strided_slice %6 {offsets = [56, 0], sizes = [8, 128], strides = [1, 1]} : vector<64x128xf32> to vector<8x128xf32>
    %100 = arith.subf %99, %98 : vector<8x128xf32>
    %cst_36 = arith.constant 5.000000e-01 : f32
    %101 = vector.broadcast %cst_36 : f32 to vector<8x128xf32>
    %102 = arith.mulf %100, %101 : vector<8x128xf32>
    %103 = arith.addf %98, %102 : vector<8x128xf32>
    %cst_37 = arith.constant 1.000000e+00 : f32
    %104 = vector.broadcast %cst_37 : f32 to vector<8x128xf32>
    %105 = arith.cmpf oge, %103, %104 : vector<8x128xf32>
    %106 = arith.extui %105 : vector<8x128xi1> to vector<8x128xi32>
    %107 = arith.sitofp %106 : vector<8x128xi32> to vector<8x128xf32>
    %108 = arith.truncf %107 : vector<8x128xf32> to vector<8x128xbf16>
    %c56 = arith.constant 56 : index
    %c0_38 = arith.constant 0 : index
    %109 = vector.load %arg7[%c56, %c0_38] : memref<64x128xbf16, #tpu.memory_space<vmem>>, vector<8x128xbf16>
    tpu.vector_store %arg7[%c56, %c0_38], %108 {strides = array<i32>} : memref<64x128xbf16, #tpu.memory_space<vmem>>, vector<8x128xbf16>,
    %cst_39 = arith.constant 0.000000e+00 : f32
    %110 = vector.broadcast %cst_39 : f32 to vector<8x128xf32>
    %111 = arith.select %105, %110, %103 : vector<8x128xi1>, vector<8x128xf32>
    %c0_40 = arith.constant 0 : index
    %c0_41 = arith.constant 0 : index
    %112 = vector.load %arg6[%c0_40, %c0_41] : memref<8x128xf32, #tpu.memory_space<vmem>>, vector<8x128xf32>
    tpu.vector_store %arg6[%c0_40, %c0_41], %111 {strides = array<i32>} : memref<8x128xf32, #tpu.memory_space<vmem>>, vector<8x128xf32>,
    %c0_42 = arith.constant 0 : index
    %c0_43 = arith.constant 0 : index
    %113 = vector.load %arg7[%c0_42, %c0_43] : memref<64x128xbf16, #tpu.memory_space<vmem>>, vector<64x128xbf16>
    %c0_44 = arith.constant 0 : index
    %c0_45 = arith.constant 0 : index
    %114 = vector.load %arg4[%c0_44, %c0_45] : memref<128x128xbf16, #tpu.memory_space<vmem>>, vector<128x128xbf16>
    %cst_46 = arith.constant dense<0.000000e+00> : vector<64x128xf32>
    %115 = tpu.matmul %113, %114, %cst_46 {dimension_numbers = #tpu.dot_dimension_numbers<[1], [0], [0], [1], [0, 0, 1, 1], [], []>} : vector<64x128xbf16>, vector<128x128xbf16>, vector<64x128xf32> -> vector<64x128xf32>
    %c0_47 = arith.constant 0 : index
    %c0_48 = arith.constant 0 : index
    %c0_49 = arith.constant 0 : index
    %116 = vector.load %arg5[%c0_47, %c0_48, %c0_49] : memref<1x64x128xf32, #tpu.memory_space<vmem>>, vector<1x64x128xf32>
    %117 = vector.shape_cast %116 : vector<1x64x128xf32> to vector<64x128xf32>
    %118 = vector.shape_cast %115 : vector<64x128xf32> to vector<1x64x128xf32>
    tpu.vector_store %arg5[%c0_47, %c0_48, %c0_49], %118 {strides = array<i32>} : memref<1x64x128xf32, #tpu.memory_space<vmem>>, vector<1x64x128xf32>,
    return
  }
  func.func @transform_0(%arg0: i32, %arg1: i32) -> (i32, i32, i32) {
    %c0_i32 = arith.constant 0 : i32
    %c0_i32_0 = arith.constant 0 : i32
    return %arg0, %arg1, %c0_i32 : i32, i32, i32
  }
  func.func @transform_1(%arg0: i32, %arg1: i32) -> (i32, i32) {
    %c0_i32 = arith.constant 0 : i32
    %c0_i32_0 = arith.constant 0 : i32
    %c0_i32_1 = arith.constant 0 : i32
    return %c0_i32, %c0_i32_0 : i32, i32
  }
  func.func @transform_2(%arg0: i32, %arg1: i32) -> (i32, i32) {
    %c0_i32 = arith.constant 0 : i32
    %c0_i32_0 = arith.constant 0 : i32
    %c0_i32_1 = arith.constant 0 : i32
    return %c0_i32, %c0_i32_0 : i32, i32
  }
  func.func @transform_3(%arg0: i32, %arg1: i32) -> (i32, i32, i32) {
    %c0_i32 = arith.constant 0 : i32
    %c0_i32_0 = arith.constant 0 : i32
    return %arg0, %arg1, %c0_i32 : i32, i32, i32
  }
}

</mosaic_0001>

<bundles_post_ra>
// kernel: spike_ffn.1
= control target key start
LH: loop header
LB: loop body
LE: loop exit
PB: predicated region body
PF: predicated region fallthrough
CT: control target
= control target key end

     0   :  { %v500_v22 = vmov 0.0   ;;  %s613_s1 = inlined_call_operand.vmem [shape: bf16[128,128], index: 1, kind: input, shape index: {}]   ;;  %s614_s2 = inlined_call_operand.vmem [shape: bf16[128,128], index: 2, kind: input, shape index: {}]   ;;  %s615_s0 = inlined_call_operand.vmem [shape: bf16[1,64,128], index: 0, kind: input, shape index: {}]   ;;  %s616_s3 = inlined_call_operand.vmem [shape: f32[1,64,128], index: 3, kind: output, shape index: {}]  }
   0x1   :  { %v470_v0 = vld [vmem:[%s613_s1 + $0x38] sm:$0xff]  ;;  %v469_v1 = vld [vmem:[%s613_s1 + $0x30] sm:$0xff]  ;;  %v468_v2 = vld [vmem:[%s613_s1 + $0x28] sm:$0xff] }
   0x2   :  { %115 = vmatpush.bf16.msra.mxu0 %v470_v0  ;;  %483 = vmatpush.bf16.msra.mxu2 %v470_v0  ;;  %v467_v3 = vld [vmem:[%s613_s1 + $0x20] sm:$0xff]  ;;  %v466_v4 = vld [vmem:[%s613_s1 + $0x18] sm:$0xff]  ;;  %v465_v6 = vld [vmem:[%s613_s1 + $0x10] sm:$0xff] }
   0x3   :  { %v482_v5 = vld [vmem:[%s614_s2 + $0x38] sm:$0xff]  ;;  %v464_v7 = vld [vmem:[%s613_s1 + $0x8] sm:$0xff]  ;;  %v463_v8 = vld [vmem:[%s613_s1] sm:$0xff] }
   0x4   :  { %314 = vmatpush.bf16.msra.mxu1 %v482_v5  ;;  %491 = vmatpush.bf16.msra.mxu3 %v482_v5  ;;  %v459_v9 = vld [vmem:[%s615_s0] sm:$0xff]  ;;  %v461_v10 = vld [vmem:[%s615_s0 + $0x10] sm:$0xff]  ;;  %v460_v11 = vld [vmem:[%s615_s0 + $0x8] sm:$0xff] }
   0x5   :  { %v462_v12 = vld [vmem:[%s615_s0 + $0x18] sm:$0xff]  ;;  %v481_v13 = vld [vmem:[%s614_s2 + $0x30] sm:$0xff]  ;;  %v480_v14 = vld [vmem:[%s614_s2 + $0x28] sm:$0xff] }
   0x6   :  { %116 = vmatpush.bf16.msra.mxu0 %v469_v1  ;;  %484 = vmatpush.bf16.msra.mxu2 %v469_v1  ;;  %v479_v15 = vld [vmem:[%s614_s2 + $0x20] sm:$0xff]  ;;  %v478_v16 = vld [vmem:[%s614_s2 + $0x18] sm:$0xff]  ;;  %v477_v17 = vld [vmem:[%s614_s2 + $0x10] sm:$0xff] }
   0x7   :  { %v476_v18 = vld [vmem:[%s614_s2 + $0x8] sm:$0xff]  ;;  %v475_v19 = vld [vmem:[%s614_s2] sm:$0xff] }
   0x8   :  { %315 = vmatpush.bf16.msra.mxu1 %v481_v13  ;;  %492 = vmatpush.bf16.msra.mxu3 %v481_v13 }
   0xa   :  { %117 = vmatpush.bf16.msra.mxu0 %v468_v2  ;;  %485 = vmatpush.bf16.msra.mxu2 %v468_v2 }
   0xc   :  { %316 = vmatpush.bf16.msra.mxu1 %v480_v14  ;;  %493 = vmatpush.bf16.msra.mxu3 %v480_v14 }
   0xe   :  { %118 = vmatpush.bf16.msra.mxu0 %v467_v3  ;;  %486 = vmatpush.bf16.msra.mxu2 %v467_v3 }
  0x10   :  { %317 = vmatpush.bf16.msra.mxu1 %v479_v15  ;;  %494 = vmatpush.bf16.msra.mxu3 %v479_v15 }
  0x12   :  { %119 = vmatpush.bf16.msra.mxu0 %v466_v4  ;;  %487 = vmatpush.bf16.msra.mxu2 %v466_v4 }
  0x14   :  { %318 = vmatpush.bf16.msra.mxu1 %v478_v16  ;;  %495 = vmatpush.bf16.msra.mxu3 %v478_v16 }
  0x16   :  { %120 = vmatpush.bf16.msra.mxu0 %v465_v6  ;;  %488 = vmatpush.bf16.msra.mxu2 %v465_v6 }
  0x18   :  { %319 = vmatpush.bf16.msra.mxu1 %v477_v17  ;;  %496 = vmatpush.bf16.msra.mxu3 %v477_v17 }
  0x1a   :  { %121 = vmatpush.bf16.msra.mxu0 %v464_v7  ;;  %489 = vmatpush.bf16.msra.mxu2 %v464_v7 }
  0x1c   :  { %320 = vmatpush.bf16.msra.mxu1 %v476_v18  ;;  %497 = vmatpush.bf16.msra.mxu3 %v476_v18 }
  0x1e   :  { %122 = vmatpush.bf16.msra.mxu0 %v463_v8  ;;  %490 = vmatpush.bf16.msra.mxu2 %v463_v8 }
  0x20   :  { %321 = vmatpush.bf16.msra.mxu1 %v475_v19  ;;  %498 = vmatpush.bf16.msra.mxu3 %v475_v19 }
  0x21   :  { %123 = vmatmul.bf16.vlgmr.msra.gmra.mxu0 %v459_v9  ;;  %133 = vmatmul.bf16.vlgmr.msra.gmra.mxu2 %v461_v10 }
  0x31   :  { %128 = vmatmul.bf16.gmra.mxu0 %v460_v11  ;;  %138 = vmatmul.bf16.gmra.mxu2 %v462_v12 }
  0x9e   :  { %v124_v20 = vpop.f32.mrf.mxu0 }
  0x9f   :  { %v146_v21 = vmul.f32 0.5, %v124_v20 }
  0xa1   :  { %vm148_vm0 = vcmp.ge.f32.partialorder %v146_v21, 1.0 }
  0xa2   :  { %v403_v23 = vsel %vm148_vm0, 1.0, %v500_v22  ;;  %v153_v26 = vsel %vm148_vm0, 0.0, %v146_v21 }
  0xa3   :  { %v151_v24 = vpack.c.bf16 %v403_v23, %v403_v23 }
  0xa4   :  { %v134_v42 = vpop.f32.mrf.mxu2 }
  0xa5   :  { %152 = vst [vmem:[#allocation3] sm:$0xf] %v151_v24 }
  0xa6   :  { %v126_v25 = vpop.f32.mrf.mxu0 }
  0xa7   :  { %v154_v27 = vsub.f32 %v126_v25, %v153_v26 }
  0xa9   :  { %v155_v28 = vmul.f32 0.5, %v154_v27 }
  0xab   :  { %v156_v29 = vadd.f32 %v155_v28, %v153_v26 }
  0xac   :  { %v136_v51 = vpop.f32.mrf.mxu2 }
  0xad   :  { %vm157_vm1 = vcmp.ge.f32.partialorder %v156_v29, 1.0 }
  0xae   :  { %v129_v30 = vpop.f32.mrf.mxu0  ;;  %v404_v31 = vsel %vm157_vm1, 1.0, %v500_v22  ;;  %v162_v32 = vsel %vm157_vm1, 0.0, %v156_v29 }
  0xaf   :  { %v160_v33 = vpack.c.bf16 %v404_v31, %v404_v31  ;;  %v163_v34 = vsub.f32 %v129_v30, %v162_v32 }
  0xb1   :  { %161 = vst [vmem:[#allocation3 + $0x4] sm:$0xf] %v160_v33  ;;  %v164_v35 = vmul.f32 0.5, %v163_v34 }
  0xb3   :  { %v165_v36 = vadd.f32 %v164_v35, %v162_v32 }
  0xb4   :  { %v139_v60 = vpop.f32.mrf.mxu2 }
  0xb5   :  { %vm166_vm2 = vcmp.ge.f32.partialorder %v165_v36, 1.0 }
  0xb6   :  { %v131_v37 = vpop.f32.mrf.mxu0  ;;  %v405_v38 = vsel %vm166_vm2, 1.0, %v500_v22  ;;  %v171_v39 = vsel %vm166_vm2, 0.0, %v165_v36 }
  0xb7   :  { %v169_v40 = vpack.c.bf16 %v405_v38, %v405_v38  ;;  %v172_v41 = vsub.f32 %v131_v37, %v171_v39 }
  0xb8   :  { %v471_v43 = vld [vmem:[#allocation3] sm:$0xff] }
  0xb9   :  { %170 = vst [vmem:[#allocation3 + $0x8] sm:$0xf] %v169_v40  ;;  %v173_v44 = vmul.f32 0.5, %v172_v41  ;;  %322 = vmatmul.bf16.vlgmr.msra.gmra.mxu1 %v471_v43 }
  0xbb   :  { %v174_v45 = vadd.f32 %v173_v44, %v171_v39 }
  0xbc   :  { %v141_v3 = vpop.f32.mrf.mxu2 }
  0xbd   :  { %vm175_vm3 = vcmp.ge.f32.partialorder %v174_v45, 1.0 }
  0xbe   :  { %v406_v46 = vsel %vm175_vm3, 1.0, %v500_v22  ;;  %v180_v47 = vsel %vm175_vm3, 0.0, %v174_v45 }
  0xbf   :  { %v178_v48 = vpack.c.bf16 %v406_v46, %v406_v46  ;;  %v181_v49 = vsub.f32 %v134_v42, %v180_v47 }
  0xc1   :  { %179 = vst [vmem:[#allocation3 + $0xc] sm:$0xf] %v178_v48  ;;  %v182_v50 = vmul.f32 0.5, %v181_v49 }
  0xc3   :  { %v183_v52 = vadd.f32 %v182_v50, %v180_v47 }
  0xc5   :  { %vm184_vm4 = vcmp.ge.f32.partialorder %v183_v52, 1.0 }
  0xc6   :  { %v407_v53 = vsel %vm184_vm4, 1.0, %v500_v22  ;;  %v189_v54 = vsel %vm184_vm4, 0.0, %v183_v52 }
  0xc7   :  { %v187_v55 = vpack.c.bf16 %v407_v53, %v407_v53  ;;  %v190_v56 = vsub.f32 %v136_v51, %v189_v54 }
  0xc8   :  { %v472_v57 = vld [vmem:[#allocation3 + $0x8] sm:$0xff] }
  0xc9   :  { %188 = vst [vmem:[#allocation3 + $0x10] sm:$0xf] %v187_v55  ;;  %v191_v58 = vmul.f32 0.5, %v190_v56  ;;  %327 = vmatmul.bf16.gmra.mxu1 %v472_v57 }
  0xcb   :  { %v192_v59 = vadd.f32 %v191_v58, %v189_v54 }
  0xcd   :  { %vm193_vm5 = vcmp.ge.f32.partialorder %v192_v59, 1.0 }
  0xce   :  { %v408_v61 = vsel %vm193_vm5, 1.0, %v500_v22  ;;  %v198_v62 = vsel %vm193_vm5, 0.0, %v192_v59 }
  0xcf   :  { %v196_v63 = vpack.c.bf16 %v408_v61, %v408_v61  ;;  %v199_v0 = vsub.f32 %v139_v60, %v198_v62 }
  0xd1   :  { %197 = vst [vmem:[#allocation3 + $0x14] sm:$0xf] %v196_v63  ;;  %v200_v1 = vmul.f32 0.5, %v199_v0 }
  0xd3   :  { %v201_v2 = vadd.f32 %v200_v1, %v198_v62 }
  0xd5   :  { %vm202_vm6 = vcmp.ge.f32.partialorder %v201_v2, 1.0 }
  0xd6   :  { %v409_v4 = vsel %vm202_vm6, 1.0, %v500_v22  ;;  %v207_v5 = vsel %vm202_vm6, 0.0, %v201_v2 }
  0xd7   :  { %v205_v6 = vpack.c.bf16 %v409_v4, %v409_v4  ;;  %v208_v7 = vsub.f32 %v141_v3, %v207_v5 }
  0xd8   :  { %v473_v8 = vld [vmem:[#allocation3 + $0x10] sm:$0xff] }
  0xd9   :  { %206 = vst [vmem:[#allocation3 + $0x18] sm:$0xf] %v205_v6  ;;  %v209_v9 = vmul.f32 0.5, %v208_v7  ;;  %332 = vmatmul.bf16.vlgmr.msra.gmra.mxu3 %v473_v8 }
  0xdb   :  { %v210_v10 = vadd.f32 %v209_v9, %v207_v5 }
  0xdd   :  { %vm211_vm7 = vcmp.ge.f32.partialorder %v210_v10, 1.0 }
  0xde   :  { %v410_v11 = vsel %vm211_vm7, 1.0, %v500_v22 }
  0xdf   :  { %v214_v12 = vpack.c.bf16 %v410_v11, %v410_v11 }
  0xe1   :  { %215 = vst [vmem:[#allocation3 + $0x1c] sm:$0xf] %v214_v12 }
  0xe8   :  { %v474_v13 = vld [vmem:[#allocation3 + $0x18] sm:$0xff] }
  0xe9   :  { %337 = vmatmul.bf16.gmra.mxu3 %v474_v13 }
 0x136   :  { %v323_v14 = vpop.f32.mrf.mxu1 }
 0x137   :  { %343 = vst [vmem:[%s616_s3] sm:$0xff] %v323_v14 }
 0x13e   :  { %v325_v15 = vpop.f32.mrf.mxu1 }
 0x13f   :  { %344 = vst [vmem:[%s616_s3 + $0x8] sm:$0xff] %v325_v15 }
 0x146   :  { %v328_v16 = vpop.f32.mrf.mxu1 }
 0x147   :  { %345 = vst [vmem:[%s616_s3 + $0x10] sm:$0xff] %v328_v16 }
 0x14e   :  { %v330_v17 = vpop.f32.mrf.mxu1 }
 0x14f   :  { %346 = vst [vmem:[%s616_s3 + $0x18] sm:$0xff] %v330_v17 }
 0x15c   :  { %v333_v18 = vpop.f32.mrf.mxu3 }
 0x15d   :  { %347 = vst [vmem:[%s616_s3 + $0x20] sm:$0xff] %v333_v18 }
 0x164   :  { %v335_v19 = vpop.f32.mrf.mxu3 }
 0x165   :  { %348 = vst [vmem:[%s616_s3 + $0x28] sm:$0xff] %v335_v19 }
 0x16c   :  { %v338_v20 = vpop.f32.mrf.mxu3 }
 0x16d   :  { %349 = vst [vmem:[%s616_s3 + $0x30] sm:$0xff] %v338_v20 }
 0x174   :  { %v340_v21 = vpop.f32.mrf.mxu3 }
 0x175   :  { %350 = vst [vmem:[%s616_s3 + $0x38] sm:$0xff] %v340_v21 }

</bundles_post_ra>
